<compile_context>
chip_gen: v6e
topology: v6e:2x2x1
jax: 0.10.0
libtpu: 0.0.40
codegen_flags: <defaults>
</compile_context>

<pallas_src>
import math
import numpy as np
import jax
import jax.numpy as jnp
from jax.experimental import pallas as pl
from jax.experimental.pallas import tpu as pltpu

_DEG2RAD = math.pi / 180.0
_SUBLANES = 8
_LANES = 128
_TILE = _SUBLANES * _LANES  # 1024 — pad the flattened image to a multiple of this

# packed scalar-parameter layout (all float32, lives in SMEM)
(P_DX, P_DY,
 P_COS_B, P_SIN_B, P_CB_MAJ, P_CB_MIN, P_NEG_BN, P_HALF_INV_N, P_AMP_B,
 P_COS_D, P_SIN_D, P_CD_MAJ, P_CD_MIN, P_AMP_D) = range(14)


def _galaxy_kernel(params_ref, x_ref, y_ref, out_ref):
    dx = params_ref[P_DX]
    dy = params_ref[P_DY]
    cos_b = params_ref[P_COS_B]
    sin_b = params_ref[P_SIN_B]
    cb_maj = params_ref[P_CB_MAJ]          # 1 / r_eff
    cb_min = params_ref[P_CB_MIN]          # 1 / ((1 - ellip_b) * r_eff)
    neg_bn = params_ref[P_NEG_BN]          # -bn
    half_inv_n = params_ref[P_HALF_INV_N]  # 1 / (2 n)
    amp_b = params_ref[P_AMP_B]            # amplitude_bulge
    cos_d = params_ref[P_COS_D]
    sin_d = params_ref[P_SIN_D]
    cd_maj = params_ref[P_CD_MAJ]          # 1 / scale_height^2
    cd_min = params_ref[P_CD_MIN]          # 1 / ((1 - ellip_d) * scale_height^2)
    amp_d = params_ref[P_AMP_D]

    xs = x_ref[...] - dx                   # (rows, 128) — full-sublane f32 vregs
    ys = y_ref[...] - dy

    # ---- Sersic bulge ----
    xm = xs * cos_b + ys * sin_b
    xn = ys * cos_b - xs * sin_b
    z2_b = (xm * cb_maj) ** 2 + (xn * cb_min) ** 2
    # z^(1/n) == exp(log(z^2) / (2n)).  At an exact-center pixel log(0) = -inf
    # and exp(-inf) = 0, matching 0 ** (1/n) = 0, so the result stays finite.
    u = jnp.exp(half_inv_n * jnp.log(z2_b))
    bulge = amp_b * jnp.exp(neg_bn * (u - 1.0))

    # ---- exponential disk ----  (the /scale_height is folded into cd_maj/cd_min)
    xm = xs * cos_d + ys * sin_d
    xn = ys * cos_d - xs * sin_d
    r_d = jnp.sqrt((xm * cd_maj) ** 2 + (xn * cd_min) ** 2)
    disk = amp_d * jnp.exp(-r_d)

    out_ref[...] = bulge + disk


class GalaxyModel:
    """JAX/Pallas port of the PyTorch GalaxyModel."""

    def __init__(self, h=24, w=24, n_images=1):
        self.h, self.w, self.n_images = h, w, n_images
        hw = h * w
        hw_pad = ((hw + _TILE - 1) // _TILE) * _TILE   # multiple of 8*128
        rows = hw_pad // _LANES                        # multiple of 8 sublanes
        self.hw, self.hw_pad, self.rows = hw, hw_pad, rows

        # torch.linspace(-h // 2, h // 2, h): endpoints inclusive, (-h)//2 start.
        ys = np.linspace((-h) // 2, h // 2, h)
        xs = np.linspace((-w) // 2, w // 2, w)
        y2d, x2d = np.meshgrid(ys, xs, indexing="ij")  # (H, W)

        xf = np.zeros((rows, _LANES), np.float32)
        yf = np.zeros((rows, _LANES), np.float32)
        xf.reshape(-1)[:hw] = x2d.reshape(-1).astype(np.float32)
        yf.reshape(-1)[:hw] = y2d.reshape(-1).astype(np.float32)
        self.x_tile = jnp.asarray(xf)                  # (rows, 128) sublane-packed
        self.y_tile = jnp.asarray(yf)

    def __call__(self, dx, dy, amplitude_bulge, r_eff, n, ellip_bulge,
                 theta_bulge, amplitude_disk, scale_height, ellip_disk, theta_disk):
        f = lambda v: jnp.asarray(v, jnp.float32)
        dx, dy = f(dx), f(dy)
        amp_b, r_eff, n_s = f(amplitude_bulge), f(r_eff), f(n)
        ell_b, th_b = f(ellip_bulge), f(theta_bulge)
        amp_d, sh = f(amplitude_disk), f(scale_height)
        ell_d, th_d = f(ellip_disk), f(theta_disk)

        # --- hoisted scalar prep (runs once per call, outside the kernel) ---
        rad_b = th_b * _DEG2RAD
        rad_d = th_d * _DEG2RAD
        bn = (2.0 * n_s - 1.0 / 3.0
              + 4.0 / (405.0 * n_s)
              + 46.0 / (25515.0 * n_s * n_s)
              + 131.0 / (1148175.0 * n_s * n_s * n_s)
              - 2194697.0 / (30690717750.0 * n_s * n_s * n_s * n_s))
        inv_sh = 1.0 / sh
        params = jnp.stack([
            dx, dy,
            jnp.cos(rad_b), jnp.sin(rad_b),
            1.0 / r_eff, 1.0 / ((1.0 - ell_b) * r_eff),
            -bn, 1.0 / (2.0 * n_s),
            amp_b,
            jnp.cos(rad_d), jnp.sin(rad_d),
            inv_sh * inv_sh, inv_sh / ((1.0 - ell_d) * sh),
            amp_d,
        ]).astype(jnp.float32)

        cost = pl.CostEstimate(
            flops=30 * self.hw_pad,
            transcendentals=5 * self.hw_pad,
            bytes_accessed=4 * (3 * self.hw_pad + 16),
        )

        # Single grid-free invocation: one (rows, 128) image tile is computed.
        img = pl.pallas_call(
            _galaxy_kernel,
            out_shape=jax.ShapeDtypeStruct((self.rows, _LANES), jnp.float32),
            in_specs=[
                pl.BlockSpec(memory_space=pltpu.MemorySpace.SMEM),  # f32[14] packed scalars
                pl.BlockSpec(memory_space=pltpu.MemorySpace.VMEM),  # x coords (rows, 128)
                pl.BlockSpec(memory_space=pltpu.MemorySpace.VMEM),  # y coords (rows, 128)
            ],
            out_specs=pl.BlockSpec(memory_space=pltpu.MemorySpace.VMEM),
            cost_estimate=cost,
        )(params, self.x_tile, self.y_tile)

        img = img.reshape(-1)[: self.hw].reshape(self.h, self.w)
        # All parameters are scalars shared by every image (matches the PyTorch
        # reference), so the N images are identical — broadcast in the wrapper
        # instead of writing N copies from the kernel.
        return jnp.broadcast_to(img, (self.n_images, self.h, self.w))


def _reference_numpy(h, w, n_images, dx, dy, amp_b, r_eff, n, ell_b, th_b,
                     amp_d, sh, ell_d, th_d):
    ys = np.linspace((-h) // 2, h // 2, h)
    xs = np.linspace((-w) // 2, w // 2, w)
    y2d, x2d = np.meshgrid(ys, xs, indexing="ij")
    x = np.broadcast_to(x2d, (n_images, h, w)).astype(np.float64)
    y = np.broadcast_to(y2d, (n_images, h, w)).astype(np.float64)

    def field(theta, scale, ellip):
        rad = np.deg2rad(theta)
        c, s = np.cos(rad), np.sin(rad)
        x_maj = (x - dx) * c + (y - dy) * s
        x_min = -(x - dx) * s + (y - dy) * c
        return np.sqrt((x_maj / scale) ** 2 + (x_min / ((1 - ellip) * scale)) ** 2)

    zb = field(th_b, r_eff, ell_b)
    zd = field(th_d, sh, ell_d)
    bn = (2.0 * n - 1.0 / 3.0 + 4.0 / (405.0 * n) + 46.0 / (25515.0 * n ** 2)
          + 131.0 / (1148175.0 * n ** 3) - 2194697.0 / (30690717750.0 * n ** 4))
    bulge = amp_b * np.exp(-bn * (zb ** (1.0 / n) - 1.0))
    disk = amp_d * np.exp(-zd / sh)
    return bulge + disk


if __name__ == "__main__":
    key = jax.random.PRNGKey(0)
    h, w, n_images = 24, 24, 2
    model = GalaxyModel(h=h, w=w, n_images=n_images)

    # deterministic scalar parameters (small jitter, kept in valid ranges)
    jit = jax.random.uniform(key, (11,), minval=0.0, maxval=0.1)
    dx = float(0.5 + jit[0])
    dy = float(-0.3 + jit[1])
    amplitude_bulge = float(1.0 + jit[2])
    r_eff = float(3.0 + jit[3])
    n = float(2.0 + jit[4])            # 0.36 < n < 8
    ellip_bulge = float(0.3 + jit[5])
    theta_bulge = float(30.0 + jit[6])
    amplitude_disk = float(0.5 + jit[7])
    scale_height = float(5.0 + jit[8])
    ellip_disk = float(0.6 + jit[9])
    theta_disk = float(45.0 + jit[10])

    out = model(dx, dy, amplitude_bulge, r_eff, n, ellip_bulge, theta_bulge,
                amplitude_disk, scale_height, ellip_disk, theta_disk)
    out = jax.block_until_ready(out)

    ref = _reference_numpy(h, w, n_images, dx, dy, amplitude_bulge, r_eff, n,
                           ellip_bulge, theta_bulge, amplitude_disk,
                           scale_height, ellip_disk, theta_disk)
    np.testing.assert_allclose(np.asarray(out), ref, rtol=2e-4, atol=2e-5)

    print("KERNEL_OK")
</pallas_src>

<mosaic_0001>
module attributes {stable_mosaic.version = 11 : i64} {
  func.func @_galaxy_kernel(%arg0: memref<14xf32, #tpu.memory_space<smem>>, %arg1: memref<8x128xf32, #tpu.memory_space<vmem>>, %arg2: memref<8x128xf32, #tpu.memory_space<vmem>>, %arg3: memref<8x128xf32, #tpu.memory_space<vmem>>) attributes {dimension_semantics = [], scalar_prefetch = 0 : i64, scratch_operands = 0 : i64, tpu.core_type = #tpu.core_type<tc>} {
    %c0 = arith.constant 0 : index
    %0 = memref.load %arg0[%c0] : memref<14xf32, #tpu.memory_space<smem>>
    %c1 = arith.constant 1 : index
    %1 = memref.load %arg0[%c1] : memref<14xf32, #tpu.memory_space<smem>>
    %c2 = arith.constant 2 : index
    %2 = memref.load %arg0[%c2] : memref<14xf32, #tpu.memory_space<smem>>
    %c3 = arith.constant 3 : index
    %3 = memref.load %arg0[%c3] : memref<14xf32, #tpu.memory_space<smem>>
    %c4 = arith.constant 4 : index
    %4 = memref.load %arg0[%c4] : memref<14xf32, #tpu.memory_space<smem>>
    %c5 = arith.constant 5 : index
    %5 = memref.load %arg0[%c5] : memref<14xf32, #tpu.memory_space<smem>>
    %c6 = arith.constant 6 : index
    %6 = memref.load %arg0[%c6] : memref<14xf32, #tpu.memory_space<smem>>
    %c7 = arith.constant 7 : index
    %7 = memref.load %arg0[%c7] : memref<14xf32, #tpu.memory_space<smem>>
    %c8 = arith.constant 8 : index
    %8 = memref.load %arg0[%c8] : memref<14xf32, #tpu.memory_space<smem>>
    %c9 = arith.constant 9 : index
    %9 = memref.load %arg0[%c9] : memref<14xf32, #tpu.memory_space<smem>>
    %c10 = arith.constant 10 : index
    %10 = memref.load %arg0[%c10] : memref<14xf32, #tpu.memory_space<smem>>
    %c11 = arith.constant 11 : index
    %11 = memref.load %arg0[%c11] : memref<14xf32, #tpu.memory_space<smem>>
    %c12 = arith.constant 12 : index
    %12 = memref.load %arg0[%c12] : memref<14xf32, #tpu.memory_space<smem>>
    %c13 = arith.constant 13 : index
    %13 = memref.load %arg0[%c13] : memref<14xf32, #tpu.memory_space<smem>>
    %c0_0 = arith.constant 0 : index
    %c0_1 = arith.constant 0 : index
    %14 = vector.load %arg1[%c0_0, %c0_1] : memref<8x128xf32, #tpu.memory_space<vmem>>, vector<8x128xf32>
    %15 = vector.broadcast %0 : f32 to vector<8x128xf32>
    %16 = arith.subf %14, %15 : vector<8x128xf32>
    %c0_2 = arith.constant 0 : index
    %c0_3 = arith.constant 0 : index
    %17 = vector.load %arg2[%c0_2, %c0_3] : memref<8x128xf32, #tpu.memory_space<vmem>>, vector<8x128xf32>
    %18 = vector.broadcast %1 : f32 to vector<8x128xf32>
    %19 = arith.subf %17, %18 : vector<8x128xf32>
    %20 = vector.broadcast %2 : f32 to vector<8x128xf32>
    %21 = arith.mulf %16, %20 : vector<8x128xf32>
    %22 = vector.broadcast %3 : f32 to vector<8x128xf32>
    %23 = arith.mulf %19, %22 : vector<8x128xf32>
    %24 = arith.addf %21, %23 : vector<8x128xf32>
    %25 = vector.broadcast %2 : f32 to vector<8x128xf32>
    %26 = arith.mulf %19, %25 : vector<8x128xf32>
    %27 = vector.broadcast %3 : f32 to vector<8x128xf32>
    %28 = arith.mulf %16, %27 : vector<8x128xf32>
    %29 = arith.subf %26, %28 : vector<8x128xf32>
    %30 = vector.broadcast %4 : f32 to vector<8x128xf32>
    %31 = arith.mulf %24, %30 : vector<8x128xf32>
    %32 = arith.mulf %31, %31 : vector<8x128xf32>
    %33 = vector.broadcast %5 : f32 to vector<8x128xf32>
    %34 = arith.mulf %29, %33 : vector<8x128xf32>
    %35 = arith.mulf %34, %34 : vector<8x128xf32>
    %36 = arith.addf %32, %35 : vector<8x128xf32>
    %37 = math.log %36 : vector<8x128xf32>
    %38 = vector.broadcast %7 : f32 to vector<8x128xf32>
    %39 = arith.mulf %38, %37 : vector<8x128xf32>
    %40 = math.exp %39 : vector<8x128xf32>
    %cst = arith.constant 1.000000e+00 : f32
    %41 = vector.broadcast %cst : f32 to vector<8x128xf32>
    %42 = arith.subf %40, %41 : vector<8x128xf32>
    %43 = vector.broadcast %6 : f32 to vector<8x128xf32>
    %44 = arith.mulf %43, %42 : vector<8x128xf32>
    %45 = math.exp %44 : vector<8x128xf32>
    %46 = vector.broadcast %8 : f32 to vector<8x128xf32>
    %47 = arith.mulf %46, %45 : vector<8x128xf32>
    %48 = vector.broadcast %9 : f32 to vector<8x128xf32>
    %49 = arith.mulf %16, %48 : vector<8x128xf32>
    %50 = vector.broadcast %10 : f32 to vector<8x128xf32>
    %51 = arith.mulf %19, %50 : vector<8x128xf32>
    %52 = arith.addf %49, %51 : vector<8x128xf32>
    %53 = vector.broadcast %9 : f32 to vector<8x128xf32>
    %54 = arith.mulf %19, %53 : vector<8x128xf32>
    %55 = vector.broadcast %10 : f32 to vector<8x128xf32>
    %56 = arith.mulf %16, %55 : vector<8x128xf32>
    %57 = arith.subf %54, %56 : vector<8x128xf32>
    %58 = vector.broadcast %11 : f32 to vector<8x128xf32>
    %59 = arith.mulf %52, %58 : vector<8x128xf32>
    %60 = arith.mulf %59, %59 : vector<8x128xf32>
    %61 = vector.broadcast %12 : f32 to vector<8x128xf32>
    %62 = arith.mulf %57, %61 : vector<8x128xf32>
    %63 = arith.mulf %62, %62 : vector<8x128xf32>
    %64 = arith.addf %60, %63 : vector<8x128xf32>
    %65 = math.sqrt %64 : vector<8x128xf32>
    %cst_4 = arith.constant 0.000000e+00 : f32
    %66 = vector.broadcast %cst_4 : f32 to vector<8x128xf32>
    %67 = arith.subf %66, %65 : vector<8x128xf32>
    %68 = math.exp %67 : vector<8x128xf32>
    %69 = vector.broadcast %13 : f32 to vector<8x128xf32>
    %70 = arith.mulf %69, %68 : vector<8x128xf32>
    %71 = arith.addf %47, %70 : vector<8x128xf32>
    %c0_5 = arith.constant 0 : index
    %c0_6 = arith.constant 0 : index
    %72 = vector.load %arg3[%c0_5, %c0_6] : memref<8x128xf32, #tpu.memory_space<vmem>>, vector<8x128xf32>
    tpu.vector_store %arg3[%c0_5, %c0_6], %71 {strides = array<i32>} : memref<8x128xf32, #tpu.memory_space<vmem>>, vector<8x128xf32>,
    return
  }
}

</mosaic_0001>

<bundles_post_ra>
// kernel: tpu_custom_call.1
= control target key start
LH: loop header
LB: loop body
LE: loop exit
PB: predicated region body
PF: predicated region fallthrough
CT: control target
= control target key end

     0   :  { %8 = vsyncpa [#allocation5], 0  ;;  %s284_s0 = inlined_call_operand.hbm [shape: f32[14], index: 0, kind: input, shape index: {}]   ;;  %s285_s1 = inlined_call_operand.hbm [shape: f32[8,128], index: 1, kind: input, shape index: {}]   ;;  %s286_s2 = inlined_call_operand.hbm [shape: f32[8,128], index: 2, kind: input, shape index: {}]   ;;  %s287_s3 = inlined_call_operand.hbm [shape: f32[8,128], index: 3, kind: output, shape index: {}]  }
   0x1   :  { %9 = vsyncpa [#allocation3], 0 }
   0x2   :  { %10 = vsyncpa [#allocation8], 0 }
   0x3   :  { %11 = vsyncpa [#allocation4], 0  ;;  %s248_s12 = smov [#allocation2]   ;;  %s249_s15 = smov [#allocation6]  }
   0x4   :  { %19 = dma.hbm_to_smem %s284_s0, 16, %s248_s12, [#allocation5]  }
   0x5   :  { %s26_s16 = sshll.u32 %s249_s15, 4  ;;  %s250_s17 = smov [#allocation7]   ;;  %s27_s16 = int_to_ptr.vmem [resolvable:$true] %s26_s16 }
   0x6   :  { %s36_s18 = sshll.u32 %s250_s17, 4  ;;  %s188_s19 = scalar_lea.vmem %s27_s16, 128  ;;  %s37_s18 = int_to_ptr.vmem [resolvable:$true] %s36_s18 }
   0x7   :  { %p189_p0 = scmp.ne.s32.totalorder %s27_s16, %s188_s19  ;;  %p193_p1 = scmp.lt.s32.totalorder %s27_s16, %s27_s16 }
   0x8   :  { %p194_p2 = scmp.lt.s32.totalorder %s188_s19, %s188_s19 }
   0xa   :  { %p195_p3 = por %p194_p2, %p193_p1 }
   0xc   :  { %p196_p4 = pnand %p195_p3, %p189_p0 }
   0xe   :  { %199 = shalt.err (!%p196_p4)
}
   0xf   :  { %29 = dma.hbm_to_vmem [thread:$0]  %s285_s1, 128, %s27_s16, [#allocation3]  }
  0x10   :  { %s208_s22 = scalar_lea.vmem %s37_s18, 128  ;;  %p213_p6 = scmp.lt.s32.totalorder %s37_s18, %s37_s18 }
  0x11   :  { %p209_p5 = scmp.ne.s32.totalorder %s37_s18, %s208_s22  ;;  %p214_p7 = scmp.lt.s32.totalorder %s208_s22, %s208_s22 }
  0x13   :  { %p215_p8 = por %p214_p7, %p213_p6 }
  0x15   :  { %p216_p9 = pnand %p215_p8, %p209_p5 }
  0x17   :  { %219 = shalt.err (!%p216_p9)
}
  0x18   :  { %39 = dma.hbm_to_vmem [thread:$0]  %s286_s2, 128, %s37_s18, [#allocation8]  }
  0x19   :  { %240 = dma.done.wait [#allocation5], 16  }
  0x1a   :  { %241 = vsyncadd [#allocation5], 4294967280 }
  0x1b   :  { %242 = dma.done.wait [#allocation3], 128  }
  0x1c   :  { %243 = vsyncadd [#allocation3], 4294967168 }
  0x1d   :  { %244 = dma.done.wait [#allocation8], 128  }
  0x1e   :  { %245 = vsyncadd [#allocation8], 4294967168 }
  0x1f   :  { %49 = sfence }
  0x20   :  { %s50_s1 = sld [smem:[#allocation2]]  ;;  %v64_v0 = vld [vmem:[#allocation6] sm:$0xff]  ;;  %v67_v1 = vld [vmem:[#allocation7] sm:$0xff]  ;;  %s251_s9 = smov [#allocation9]  }
  0x21   :  { %s144_s24 = sld [smem:[#allocation2 + $0x1]]  ;;  %s133_s10 = sshll.u32 %s251_s9, 4  ;;  %s134_s10 = int_to_ptr.vmem [resolvable:$true] %s133_s10 }
  0x22   :  { %s145_s25 = sld [smem:[#allocation2 + $0x2]]  ;;  %s220_s11 = scalar_lea.vmem %s134_s10, 128 }
  0x23   :  { %s146_s26 = sld [smem:[#allocation2 + $0x3]]  ;;  %p221_p10 = scmp.ne.s32.totalorder %s134_s10, %s220_s11 }
  0x24   :  { %s147_s27 = sld [smem:[#allocation2 + $0x4]]  ;;  %p225_p11 = scmp.lt.s32.totalorder %s134_s10, %s134_s10 }
  0x25   :  { %s148_s28 = sld [smem:[#allocation2 + $0x5]]  ;;  %p226_p12 = scmp.lt.s32.totalorder %s220_s11, %s220_s11 }
  0x26   :  { %v65_v2 = vstv %s50_s1  ;;  %s152_s2 = sld [smem:[#allocation2 + $0x9]] }
  0x27   :  { %v66_v3 = vsub.f32 %v64_v0, %v65_v2  ;;  %v68_v4 = vstv %s144_s24  ;;  %s153_s29 = sld [smem:[#allocation2 + $0xa]]  ;;  %p227_p13 = por %p226_p12, %p225_p11 }
  0x28   :  { %v69_v5 = vsub.f32 %v67_v1, %v68_v4  ;;  %v70_v6 = vstv %s145_s25  ;;  %s154_s30 = sld [smem:[#allocation2 + $0xb]] }
  0x29   :  { %v71_v7 = vmul.f32 %v70_v6, %v66_v3  ;;  %v72_v8 = vstv %s146_s26  ;;  %s155_s4 = sld [smem:[#allocation2 + $0xc]]  ;;  %p228_p0 = pnand %p227_p13, %p221_p10 }
  0x2a   :  { %v73_v9 = vmul.f32 %v72_v8, %v69_v5  ;;  %v75_v10 = vmul.f32 %v70_v6, %v69_v5  ;;  %v76_v11 = vmul.f32 %v72_v8, %v66_v3  ;;  %v78_v12 = vstv %s147_s27  ;;  %s150_s5 = sld [smem:[#allocation2 + $0x7]] }
  0x2b   :  { %v81_v13 = vstv %s148_s28  ;;  %s149_s6 = sld [smem:[#allocation2 + $0x6]] }
  0x2c   :  { %v74_v14 = vadd.f32 %v73_v9, %v71_v7  ;;  %v77_v15 = vsub.f32 %v75_v10, %v76_v11  ;;  %v98_v18 = vstv %s152_s2  ;;  %s156_s7 = sld [smem:[#allocation2 + $0xd]] }
  0x2d   :  { %v99_v21 = vmul.f32 %v98_v18, %v66_v3  ;;  %v100_v22 = vstv %s153_s29  ;;  %v103_v24 = vmul.f32 %v98_v18, %v69_v5  ;;  %s151_s8 = sld [smem:[#allocation2 + $0x8]] }
  0x2e   :  { %v79_v16 = vmul.f32 %v78_v12, %v74_v14  ;;  %v82_v17 = vmul.f32 %v81_v13, %v77_v15  ;;  %v101_v23 = vmul.f32 %v100_v22, %v69_v5  ;;  %v104_v25 = vmul.f32 %v100_v22, %v66_v3 }
  0x2f   :  { %v106_v27 = vstv %s154_s30  ;;  %v109_v28 = vstv %s155_s4 }
  0x30   :  { %v80_v19 = vmul.f32 %v79_v16, %v79_v16  ;;  %v83_v20 = vmul.f32 %v82_v17, %v82_v17  ;;  %v102_v29 = vadd.f32 %v101_v23, %v99_v21  ;;  %v105_v30 = vsub.f32 %v103_v24, %v104_v25 }
  0x31   :  { %v87_v37 = vstv %s150_s5  ;;  %v92_v49 = vstv %s149_s6 }
  0x32   :  { %v84_v26 = vadd.f32 %v83_v20, %v80_v19  ;;  %v107_v31 = vmul.f32 %v106_v27, %v102_v29  ;;  %v110_v32 = vmul.f32 %v109_v28, %v105_v30  ;;  %v123_v54 = vstv %s156_s7 }
  0x33   :  { %v96_v55 = vstv %s151_s8 }
  0x34   :  { %162 = vlog2.f32 %v84_v26  ;;  %v108_v33 = vmul.f32 %v107_v31, %v107_v31  ;;  %v111_v34 = vmul.f32 %v110_v32, %v110_v32 }
  0x36   :  { %v112_v35 = vadd.f32 %v111_v34, %v108_v33 }
  0x38   :  { %164 = vrsqrt.f32 %v112_v35  ;;  %vm115_vm0 = vcmp.eq.f32.partialorder %v112_v35, inf  ;;  %v118_v43 = vand.u32 2147483648, %v112_v35  ;;  %vm117_vm1 = vcmp.eq.f32.partialorder %v112_v35, 0.0 }
  0x41   :  { %v163_v36 = vpop.eup %162 }
  0x42   :  { %v86_v38 = vmul.f32 0.6931472, %v163_v36 }
  0x44   :  { %v88_v39 = vmul.f32 %v87_v37, %v86_v38 }
  0x45   :  { %v165_v41 = vpop.eup %164 }
  0x46   :  { %v89_v40 = vmul.f32 1.442695, %v88_v39  ;;  %v114_v42 = vmul.f32 %v165_v41, %v112_v35 }
  0x48   :  { %166 = vpow2.f32 %v89_v40  ;;  %v116_v44 = vsel %vm115_vm0, %v112_v35, %v114_v42 }
  0x49   :  { %v119_v45 = vsel %vm117_vm1, %v118_v43, %v116_v44 }
  0x4a   :  { %v120_v46 = vsub.f32 0.0, %v119_v45 }
  0x4c   :  { %v121_v47 = vmul.f32 1.442695, %v120_v46 }
  0x4e   :  { %168 = vpow2.f32 %v121_v47 }
  0x55   :  { %v167_v48 = vpop.eup %166 }
  0x56   :  { %v157_v50 = vadd.f32 -1.0, %v167_v48 }
  0x58   :  { %v93_v51 = vmul.f32 %v157_v50, %v92_v49 }
  0x5a   :  { %v94_v52 = vmul.f32 1.442695, %v93_v51 }
  0x5b   :  { %v169_v53 = vpop.eup %168 }
  0x5c   :  { %170 = vpow2.f32 %v94_v52  ;;  %v124_v56 = vmul.f32 %v169_v53, %v123_v54 }
  0x69   :  { %v171_v57 = vpop.eup %170 }
  0x6a   :  { %v97_v58 = vmul.f32 %v171_v57, %v96_v55 }
  0x6c   :  { %v125_v59 = vadd.f32 %v124_v56, %v97_v58 }
  0x6e   :  { %126 = vst [vmem:[#allocation9] sm:$0xff] %v125_v59 }
  0x6f   :  { %231 = shalt.err (!%p228_p0)
}
  0x70   :  { %136 = dma.vmem_to_hbm [thread:$0]  %s134_s10, 128, %s287_s3, [#allocation4]  }
  0x71   :  { %246 = dma.done.wait [#allocation4], 128  }
  0x72   :  { %247 = vsyncadd [#allocation4], 4294967168 }
  0x73   :  { %140 = vsyncpa [#allocation3], 1 }
  0x74   :  { %141 = vsyncpa [#allocation8], 1 }
  0x75   :  { %142 = vsyncpa [#allocation4], 1 }
  0x76   :  { %143 = vsyncpa [#allocation5], 1 }

</bundles_post_ra>
